<compile_context>
chip_gen: v7x
topology: tpu7x:2x2x1
jax: 0.10.0
libtpu: 0.0.40
codegen_flags: <defaults>
</compile_context>

<pallas_src>
import functools

import numpy as np
import jax
import jax.numpy as jnp
from jax.experimental import pallas as pl
from jax.experimental.pallas import tpu as pltpu


def _bert_embedding_kernel(ids_ref, seed_ref, table_ref, pos_ref, out_ref,
                           gather_buf, sems, *, tile_tokens, seq_len, p,
                           training):
    # ids_ref:    (B*S,)   int32 in SMEM (scalar prefetch)
    # seed_ref:   (1,)     int32 in SMEM (scalar prefetch)
    # table_ref:  (V, E)   embedding table, left in HBM (pl.ANY)
    # pos_ref:    (TT, E)  positional-encoding rows for this tile
    # out_ref:    (1, TT, E) output block
    # gather_buf: (TT, E)  VMEM scratch for gathered embedding rows
    # sems:       (TT,)    DMA semaphores, one per gathered row
    b = pl.program_id(0)
    t = pl.program_id(1)
    base = b * seq_len + t * tile_tokens          # flat index of tile's first token
    vocab = table_ref.shape[0]

    # Issue one row DMA per token.  All starts are issued before any wait so the
    # DMA engine streams the (non-contiguous) rows back-to-back.
    @pl.loop(0, tile_tokens)
    def _issue(i):
        tok = ids_ref[base + i]
        tok = jnp.clip(tok, 0, vocab - 1)         # guard OOB ids (torch would raise)
        pltpu.make_async_copy(table_ref.at[pl.ds(tok, 1), :],
                              gather_buf.at[pl.ds(i, 1), :],
                              sems.at[i]).start()

    # Wait for all row DMAs (src in the wait descriptor only fixes the size).
    @pl.loop(0, tile_tokens)
    def _wait(i):
        pltpu.make_async_copy(table_ref.at[pl.ds(0, 1), :],
                              gather_buf.at[pl.ds(i, 1), :],
                              sems.at[i]).wait()

    y = gather_buf[...].astype(jnp.float32) + pos_ref[...]

    if training and p > 0.0:
        # Inverted dropout (train mode).  Keep-mask straight from the uint32
        # PRNG bits: P(bits >= thresh) = 1 - p.
        pltpu.prng_seed(seed_ref[0] + b * pl.num_programs(1) + t)
        bits = pltpu.bitcast(pltpu.prng_random_bits(y.shape), jnp.uint32)
        thresh = jnp.uint32(min(int(round(p * (1 << 32))), (1 << 32) - 1))
        keep = bits >= thresh
        y = jnp.where(keep, y * (1.0 / (1.0 - p)), jnp.float32(0.0))

    out_ref[0] = y.astype(out_ref.dtype)


def sinusoidal_pos_encoding(max_len, d_model, dtype=jnp.float32):
    """Matches BERT-pytorch PositionalEmbedding (fixed sin/cos table)."""
    pos = jnp.arange(max_len, dtype=jnp.float32)[:, None]                  # (L, 1)
    div = jnp.exp(jnp.arange(0, d_model, 2, dtype=jnp.float32)
                  * (-np.log(10000.0) / d_model))                          # (E/2,)
    ang = pos * div                                                        # (L, E/2)
    pe = jnp.stack([jnp.sin(ang), jnp.cos(ang)], axis=-1)                  # (L, E/2, 2)
    return pe.reshape(max_len, d_model).astype(dtype)


def bert_embedding(sequence, emb_table, pos_enc, *, dropout_p=0.1,
                   training=False, seed=0, tile_tokens=256, out_dtype=None):
    """sequence: (B, S) int32; emb_table: (V, E); pos_enc: (S, E) -> (B, S, E)."""
    B, S = sequence.shape
    V, E = emb_table.shape
    assert pos_enc.shape == (S, E)
    tt = min(int(tile_tokens), S)
    assert S % tt == 0, "tile_tokens (capped at S) must divide S"
    out_dtype = emb_table.dtype if out_dtype is None else out_dtype

    ids_flat = sequence.reshape(-1).astype(jnp.int32)     # (B*S,) -> SMEM
    seed_arr = jnp.array([seed], dtype=jnp.int32)

    kernel = functools.partial(_bert_embedding_kernel,
                               tile_tokens=tt, seq_len=S,
                               p=float(dropout_p), training=training)

    out = pl.pallas_call(
        kernel,
        out_shape=jax.ShapeDtypeStruct((B, S, E), out_dtype),
        grid_spec=pltpu.PrefetchScalarGridSpec(
            num_scalar_prefetch=2,                         # ids, seed
            grid=(B, S // tt),
            in_specs=[
                pl.BlockSpec(memory_space=pl.ANY),                       # table stays in HBM
                pl.BlockSpec((tt, E), lambda b, t, ids, seed: (t, 0)),   # pos rows (no jnp.tile)
            ],
            out_specs=pl.BlockSpec((1, tt, E),
                                   lambda b, t, ids, seed: (b, t, 0)),
            scratch_shapes=[
                pltpu.VMEM((tt, E), emb_table.dtype),      # gathered rows
                pltpu.SemaphoreType.DMA((tt,)),            # one sem per row DMA
            ]),
        compiler_params=pltpu.CompilerParams(
            dimension_semantics=("parallel", "arbitrary")),
    )(ids_flat, seed_arr, emb_table, pos_enc)
    return out


if __name__ == "__main__":
    B, S = 2, 8
    vocab_size, embed_size = 512, 128      # lane-dense E (multiple of 128)

    key = jax.random.PRNGKey(0)
    k_tab, k_ids = jax.random.split(key)

    # TokenEmbedding == nn.Embedding(vocab_size, embed_size, padding_idx=0):
    # normal init with row 0 (padding_idx) zeroed.
    table = jax.random.normal(k_tab, (vocab_size, embed_size), jnp.float32)
    table = table.at[0].set(0.0)

    sequence = jax.random.randint(k_ids, (B, S), 0, vocab_size, dtype=jnp.int32)
    pe = sinusoidal_pos_encoding(S, embed_size)

    # Eval-mode forward (nn.Dropout is identity in eval); train-mode dropout is
    # implemented in-kernel via the TPU PRNG and selectable with training=True.
    out = bert_embedding(sequence, table, pe, dropout_p=0.1, training=False)
    out = jax.block_until_ready(out)

    # Pure-JAX reference: embedding lookup + positional encoding broadcast.
    ref = jnp.take(table, sequence, axis=0) + pe[None, :, :]
    assert out.shape == (B, S, embed_size)
    np.testing.assert_allclose(np.asarray(out), np.asarray(ref),
                               atol=1e-5, rtol=1e-5)
    print("KERNEL_OK")
</pallas_src>

<mosaic_0001>
module attributes {stable_mosaic.version = 11 : i64} {
  func.func @_bert_embedding_kernel(%arg0: i32, %arg1: i32, %arg2: memref<16xi32, #tpu.memory_space<smem>>, %arg3: memref<1xi32, #tpu.memory_space<smem>>, %arg4: memref<512x128xf32, #tpu.memory_space<any>>, %arg5: memref<8x128xf32, #tpu.memory_space<vmem>>, %arg6: memref<1x8x128xf32, #tpu.memory_space<vmem>>, %arg7: memref<8x128xf32, #tpu.memory_space<vmem>>, %arg8: memref<8x!tpu.dma_semaphore, #tpu.memory_space<semaphore_mem>>) attributes {dimension_semantics = [#tpu.dimension_semantics<parallel>, #tpu.dimension_semantics<arbitrary>], iteration_bounds = array<i64: 2, 1>, scalar_prefetch = 2 : i64, scratch_operands = 2 : i64, tpu.core_type = #tpu.core_type<tc>, window_params = [{}, {transform_indices = @transform_1, window_bounds = array<i64: 8, 128>}, {transform_indices = @transform_2, window_bounds = array<i64: 1, 8, 128>}]} {
    %c8_i32 = arith.constant 8 : i32
    %0 = arith.muli %arg0, %c8_i32 : i32
    %c8_i32_0 = arith.constant 8 : i32
    %1 = arith.muli %arg1, %c8_i32_0 : i32
    %2 = arith.addi %0, %1 : i32
    %c0_i32 = arith.constant 0 : i32
    %c8_i32_1 = arith.constant 8 : i32
    %3 = arith.addi %c0_i32, %c8_i32_1 : i32
    %c1_i32 = arith.constant 1 : i32
    scf.for %arg9 = %c0_i32 to %3 step %c1_i32  : i32 {
      %c1_i32_13 = arith.constant 1 : i32
      %11 = arith.muli %arg9, %c1_i32_13 : i32
      %c0_i32_14 = arith.constant 0 : i32
      %12 = arith.addi %c0_i32_14, %11 : i32
      %13 = arith.addi %2, %12 : i32
      %14 = arith.index_cast %13 : i32 to index
      %15 = memref.load %arg2[%14] : memref<16xi32, #tpu.memory_space<smem>>
      %c0_i32_15 = arith.constant 0 : i32
      %c511_i32 = arith.constant 511 : i32
      %16 = arith.maxsi %c0_i32_15, %15 : i32
      %17 = arith.minsi %c511_i32, %16 : i32
      %c0_i32_16 = arith.constant 0 : i32
      %18 = tpu.memref_slice %arg4[%17, %c0_i32_16] : memref<512x128xf32, #tpu.memory_space<any>> -> memref<1x128xf32, #tpu.memory_space<any>>
      %c0_i32_17 = arith.constant 0 : i32
      %19 = tpu.memref_slice %arg7[%12, %c0_i32_17] : memref<8x128xf32, #tpu.memory_space<vmem>> -> memref<1x128xf32, #tpu.memory_space<vmem>>
      %20 = tpu.memref_slice %arg8[%12] : memref<8x!tpu.dma_semaphore, #tpu.memory_space<semaphore_mem>> -> memref<1x!tpu.dma_semaphore, #tpu.memory_space<semaphore_mem>>
      %21 = tpu.memref_squeeze %20 : memref<1x!tpu.dma_semaphore, #tpu.memory_space<semaphore_mem>> -> memref<!tpu.dma_semaphore, #tpu.memory_space<semaphore_mem>>
      tpu.enqueue_dma source(%18 : memref<1x128xf32, #tpu.memory_space<any>>) target(%19 : memref<1x128xf32, #tpu.memory_space<vmem>>) target_semaphore(%21 : memref<!tpu.dma_semaphore, #tpu.memory_space<semaphore_mem>>)
    }
    %c8_i32_2 = arith.constant 8 : i32
    %c0_i32_3 = arith.constant 0 : i32
    %c8_i32_4 = arith.constant 8 : i32
    %4 = arith.addi %c0_i32_3, %c8_i32_4 : i32
    %c1_i32_5 = arith.constant 1 : i32
    scf.for %arg9 = %c0_i32_3 to %4 step %c1_i32_5  : i32 {
      %c1_i32_13 = arith.constant 1 : i32
      %11 = arith.muli %arg9, %c1_i32_13 : i32
      %c0_i32_14 = arith.constant 0 : i32
      %12 = arith.addi %c0_i32_14, %11 : i32
      %c0_i32_15 = arith.constant 0 : i32
      %c0_i32_16 = arith.constant 0 : i32
      %13 = tpu.memref_slice %arg4[%c0_i32_15, %c0_i32_16] : memref<512x128xf32, #tpu.memory_space<any>> -> memref<1x128xf32, #tpu.memory_space<any>>
      %c0_i32_17 = arith.constant 0 : i32
      %14 = tpu.memref_slice %arg7[%12, %c0_i32_17] : memref<8x128xf32, #tpu.memory_space<vmem>> -> memref<1x128xf32, #tpu.memory_space<vmem>>
      %15 = tpu.memref_slice %arg8[%12] : memref<8x!tpu.dma_semaphore, #tpu.memory_space<semaphore_mem>> -> memref<1x!tpu.dma_semaphore, #tpu.memory_space<semaphore_mem>>
      %16 = tpu.memref_squeeze %15 : memref<1x!tpu.dma_semaphore, #tpu.memory_space<semaphore_mem>> -> memref<!tpu.dma_semaphore, #tpu.memory_space<semaphore_mem>>
      tpu.wait_dma2 semaphore(%16 : memref<!tpu.dma_semaphore, #tpu.memory_space<semaphore_mem>>) src(%13 : memref<1x128xf32, #tpu.memory_space<any>>) dst(%14 : memref<1x128xf32, #tpu.memory_space<vmem>>)
    }
    %c8_i32_6 = arith.constant 8 : i32
    %c0 = arith.constant 0 : index
    %c0_7 = arith.constant 0 : index
    %5 = vector.load %arg7[%c0, %c0_7] : memref<8x128xf32, #tpu.memory_space<vmem>>, vector<8x128xf32>
    %c0_8 = arith.constant 0 : index
    %c0_9 = arith.constant 0 : index
    %6 = vector.load %arg5[%c0_8, %c0_9] : memref<8x128xf32, #tpu.memory_space<vmem>>, vector<8x128xf32>
    %7 = arith.addf %5, %6 : vector<8x128xf32>
    %c0_10 = arith.constant 0 : index
    %c0_11 = arith.constant 0 : index
    %c0_12 = arith.constant 0 : index
    %8 = vector.load %arg6[%c0_10, %c0_11, %c0_12] : memref<1x8x128xf32, #tpu.memory_space<vmem>>, vector<1x8x128xf32>
    %9 = vector.shape_cast %8 : vector<1x8x128xf32> to vector<8x128xf32>
    %10 = vector.shape_cast %7 : vector<8x128xf32> to vector<1x8x128xf32>
    tpu.vector_store %arg6[%c0_10, %c0_11, %c0_12], %10 {strides = array<i32>} : memref<1x8x128xf32, #tpu.memory_space<vmem>>, vector<1x8x128xf32>,
    return
  }
  func.func @transform_1(%arg0: i32, %arg1: i32, %arg2: memref<16xi32, #tpu.memory_space<smem>>, %arg3: memref<1xi32, #tpu.memory_space<smem>>) -> (i32, i32) {
    %c0_i32 = arith.constant 0 : i32
    %c0_i32_0 = arith.constant 0 : i32
    return %arg1, %c0_i32 : i32, i32
  }
  func.func @transform_2(%arg0: i32, %arg1: i32, %arg2: memref<16xi32, #tpu.memory_space<smem>>, %arg3: memref<1xi32, #tpu.memory_space<smem>>) -> (i32, i32, i32) {
    %c0_i32 = arith.constant 0 : i32
    %c0_i32_0 = arith.constant 0 : i32
    return %arg0, %arg1, %c0_i32 : i32, i32, i32
  }
}

</mosaic_0001>

<bundles_post_ra>
// kernel: tpu_custom_call.1
= control target key start
LH: loop header
LB: loop body
LE: loop exit
PB: predicated region body
PF: predicated region fallthrough
CT: control target
= control target key end

     0   :  { %s746_s0 = inlined_call_operand.vmem [shape: s32[16], index: 0, kind: input, shape index: {}]   ;;  %s747_s1 = inlined_call_operand.<no memory space> [shape: s32[1], index: 1, kind: input, shape index: {}]   ;;  %s748_s2 = inlined_call_operand.hbm [shape: f32[512,128], index: 2, kind: input, shape index: {}]   ;;  %s749_s3 = inlined_call_operand.vmem [shape: f32[8,128], index: 3, kind: input, shape index: {}]   ;;  %s750_s4 = inlined_call_operand.hbm [shape: f32[2,8,128], index: 4, kind: output, shape index: {}]  }
   0x1   :  { %s9_s17 = sshll.u32 %s746_s0, 4  ;;  %s10_s17 = int_to_ptr.vmem [resolvable:$true] %s9_s17 }
   0x2   :  { %s435_s18 = scalar_lea.vmem %s10_s17, 16  ;;  %p440_p1 = scmp.lt.s32.totalorder %s10_s17, %s10_s17 }
   0x3   :  { %p436_p0 = scmp.ne.s32.totalorder %s10_s17, %s435_s18  ;;  %p441_p2 = scmp.lt.s32.totalorder %s435_s18, %s435_s18 }
   0x5   :  { %p442_p3 = por %p441_p2, %p440_p1 }
   0x7   :  { %p443_p4 = pnand %p442_p3, %p436_p0 }
   0x9   :  { %446 = shalt.err (!%p443_p4)  }
   0xa   :  { %s571_s1 = smov [#allocation5]  }
   0xb   :  { %12 = dma.vmem_to_smem %s10_s17, 16, %s571_s1, [#allocation4] }
   0xc   :  { %531 = dma.done.wait [#allocation4], 16 }
   0xd   :  { %532 = vsyncadd [#allocation4], 4294967280 }
   0xe   :  { %15 = sfence }
   0xf   :  { %16 = vsyncpa [#allocation8], 0 }
  0x10   :  { %18 = vsyncpa [#allocation8 + $0x1], 0  ;;  %s602_s19 = smov 0   ;;  %s604_s20 = smov 0  }
  0x11   :  { %s606_s0 = smov 0   ;;  %s608_s21 = smov 0  }
  0x12   :  { %s610_s22 = smov 0   ;;  %s612_s23 = smov 0  }
  0x13 LB: > { %s336_s24 = sadd.s32 4294967295, %s561_s23   ;;  %s337_s25 = sadd.s32 4294967294, %s561_s23   ;;  %s561_s23 = sphi %s612_s23, %s24_s23   ;;  %s557_s22 = sphi %s610_s22, %s759_s22   ;;  %s553_s21 = sphi %s608_s21, %s758_s21   ;;  %s549_s0 = sphi %s606_s0, %s757_s0   ;;  %s545_s20 = sphi %s604_s20, %s756_s20   ;;  %s541_s19 = sphi %s602_s19, %s755_s19  }
  0x14   : > { %s36_s26 = sadd.s32 1, %s557_s22  ;;  %s71_s27 = sadd.s32 1, %s549_s0 }
  0x15   : > { %p38_p5 = scmp.ge.s32.totalorder %s36_s26, 2  ;;  %p81_p6 = scmp.ne.s32.totalorder %s549_s0, %s545_s20 }
  0x16   : > { %p82_p7 = scmp.eq.s32.totalorder %s336_s24, 1  ;;  %p87_p8 = scmp.ne.s32.totalorder %s545_s20, %s541_s19 }
  0x17   : > { %s761_s26 = smov (%p38_p5, %s36_s26), 0  ;;  %p88_p10 = scmp.eq.s32.totalorder %s337_s25, 1 }
  0x18   : > { %p642_p9 = por %p82_p7, %p81_p6  ;;  %s66_s29 = ssub.s32 %s557_s22, %s761_s26 }
  0x19   : > { %p340_p11 = scmp.ge.s32.totalorder %s561_s23, 1  ;;  %p69_p12 = scmp.eq.s32.totalorder %s66_s29, 0 }
  0x1a   : > { %p649_p13 = por %p88_p10, %p87_p8  ;;  %p113_p0 = scmp.lt.s32.totalorder %s561_s23, 3 }
  0x1b   : > { %s655_s5 = scalar_select %p69_p12, %s549_s0, %s71_s27  }
  0x1c   : > { %s752_s30 = scalar_select %p649_p13, 1, 0 }
  0x1d   : > { %p114_p1 = pnand %p340_p11, %p113_p0 }
  0x1e   : > { %s129_s6 = sand.u32 (!%p114_p1), 1, %s545_s20   ;;  %s664_s10 = smov (!%p114_p1), 0  }
  0x1f   : > { %117 = sbr.rel (%p114_p1) target bundleno = 112 (0x70), region = 24  ;;  %s661_s8 = sshll.u32 (!%p114_p1), %s129_s6, 3 }
  0x20   : > { %s131_s9 = scalar_lea.vmem (!%p114_p1), [#allocation7], %s661_s8 }
  0x26 LB: >> { %s753_s7 = sshll.u32 %s553_s21, 3  ;;  %s153_s13 = scalar_lea.vmem [#allocation2], %s565_s10  ;;  %s565_s10 = sphi %s664_s10, %s144_s10  }
  0x27   : >> { %s145_s11 = sadd.s32 %s565_s10, %s753_s7  ;;  %s162_s14 = sshll.u32 %s153_s13, 4  ;;  %s163_s14 = int_to_ptr.vmem [resolvable:$true] %s162_s14 }
  0x28   : >> { %s146_s12 = sld [smem:[#allocation5 + %s145_s11]]  ;;  %s154_s1 = scalar_lea.sflag [#allocation3], %s565_s10 }
  0x29   : >> { %s449_s29 = scalar_lea.hbm %s748_s2, 8192 }
  0x2e   : >> { %p147_p2 = scmp.gt.s32.totalorder %s146_s12, 0  ;;  %p343_p3 = scmp.lt.s32.totalorder %s146_s12, 511 }
  0x30   : >> { %s763_s12 = smov (!%p147_p2, %s146_s12), 0 }
  0x31   : >> { %s765_s12 = smov (!%p343_p3, %s763_s12), 511 }
  0x32   : >> { %s348_s15 = sshll.u32 %s765_s12, 4 }
  0x33   : >> { %s152_s18 = scalar_lea.hbm %s748_s2, %s348_s15 }
  0x34   : >> { %s447_s24 = scalar_lea.hbm %s152_s18, 16  ;;  %p450_p5 = scmp.lt.u32.totalorder %s152_s18, %s748_s2 }
  0x35   : >> { %p448_p4 = scmp.ne.s32.totalorder %s152_s18, %s447_s24  ;;  %p451_p6 = scmp.lt.u32.totalorder %s449_s29, %s447_s24 }
  0x36   : >> { %p453_p8 = scmp.lt.u32.totalorder %s447_s24, %s152_s18 }
  0x37   : >> { %p452_p7 = por %p451_p6, %p450_p5 }
  0x39   : >> { %p454_p10 = por %p453_p8, %p452_p7 }
  0x3b   : >> { %p455_p11 = pnand %p454_p10, %p448_p4 }
  0x3d   : >> { %458 = shalt.err (!%p455_p11)  }
  0x3e   : >> { %s459_s12 = scalar_lea.vmem %s163_s14, 16  ;;  %s572_s13 = smov [#allocation2]  }
  0x3f   : >> { %p460_p12 = scmp.ne.s32.totalorder %s163_s14, %s459_s12  ;;  %s461_s15 = sshll.u32 %s572_s13, 4  ;;  %s462_s15 = int_to_ptr.vmem [resolvable:$false] %s461_s15 }
  0x40   : >> { %s463_s16 = scalar_lea.vmem %s462_s15, 128  ;;  %p464_p0 = scmp.lt.s32.totalorder %s163_s14, %s462_s15 }
  0x41   : >> { %p465_p1 = scmp.lt.s32.totalorder %s463_s16, %s459_s12 }
  0x43   : >> { %p466_p2 = por %p465_p1, %p464_p0 }
  0x45   : >> { %p467_p3 = pnand %p466_p2, %p460_p12 }
  0x47   : >> { %470 = shalt.err (!%p467_p3)  }
  0x48   : >> { %165 = dma.hbm_to_vmem [thread:$0]  %s152_s18, 16, %s163_s14, %s154_s1 }
  0x49   : >> { %s144_s10 = sadd.s32 1, %s565_s10  }
  0x4a   : >> { %p141_p13 = scmp.ge.s32.totalorder %s144_s10, 8  }
  0x4b   : > { %s567_s7 = smov (%p141_p13), 0  }
  0x4c   : > { %143 = sbr.rel (!%p141_p13) target bundleno = 38 (0x26), region = 88 }
  0x53 LB: >> { %s172_s17 = scalar_lea.sflag [#allocation3], %s569_s7  ;;  %s569_s7 = sphi %s567_s7, %s171_s7  }
  0x54   : >> { %533 = dma.done.wait %s172_s17, 16 }
  0x55   : >> { %534 = vsyncadd %s172_s17, 4294967280  ;;  %s171_s7 = sadd.s32 1, %s569_s7  }
  0x56   : >> { %p168_p4 = scmp.ge.s32.totalorder %s171_s7, 8  }
  0x57   : > { %v176_v0 = vld [vmem:[#allocation2] sm:$0xff] (%p168_p4)  ;;  %s350_s10 = sshll.u32 (%p168_p4), %s553_s21, 7  ;;  %s195_s27 = sshll.u32 (%p168_p4), %s131_s9, 4  ;;  %s697_s27 = int_to_ptr.vmem [resolvable:$true] %s195_s27 }
  0x58   : > { %170 = sbr.rel (!%p168_p4) target bundleno = 83 (0x53), region = 99  ;;  %v177_v1 = vld [vmem:[%s749_s3] sm:$0xff] (%p168_p4)  ;;  %s693_s25 = scalar_lea.hbm (%p168_p4), %s750_s4, %s350_s10 }
  0x59   : > { %v178_v2 = vadd.f32 (%p168_p4), %v177_v1, %v176_v0  ;;  %s181_s29 = scalar_lea.sflag (%p168_p4), [#allocation8], %s129_s6  ;;  %s471_s11 = scalar_lea.vmem (%p168_p4), %s697_s27, 128 }
  0x5a   : > { %p472_p13 = scmp.ne.s32.totalorder (%p168_p4), %s697_s27, %s471_s11  ;;  %s573_s21 = smov (%p168_p4), [#allocation7]  }
  0x5b   : > { %179 = vst [vmem:[%s131_s9] sm:$0xff] (%p168_p4), %v178_v2  ;;  %s475_s12 = sshll.u32 (%p168_p4), %s573_s21, 4  ;;  %s476_s12 = int_to_ptr.vmem [resolvable:$false] %s475_s12 }
  0x5c   : > { %p473_p5 = pnand (%p168_p4), %p472_p13, %p642_p9  ;;  %s477_s13 = scalar_lea.vmem (%p168_p4), %s476_s12, 256 }
  0x5d   : > { %p478_p7 = scmp.lt.s32.totalorder (%p168_p4), %s697_s27, %s476_s12  ;;  %p479_p8 = scmp.lt.s32.totalorder (%p168_p4), %s477_s13, %s471_s11 }
  0x5e   : > { %p474_p6 = pneg (%p168_p4), %p473_p5 }
  0x5f   : > { %p480_p10 = por %p479_p8, %p478_p7 }
  0x61   : > { %p481_p11 = pnand %p480_p10, %p474_p6 }
  0x63   : > { %484 = shalt.err (!%p481_p11)
}
  0x64   : > { %s485_s6 = scalar_lea.hbm %s693_s25, 128  ;;  %s489_s15 = scalar_lea.hbm %s750_s4, 256 }
  0x65   : > { %p486_p12 = scmp.ne.s32.totalorder %s693_s25, %s485_s6  ;;  %p490_p2 = scmp.lt.u32.totalorder %s693_s25, %s750_s4 }
  0x66   : > { %p491_p3 = scmp.lt.u32.totalorder %s489_s15, %s485_s6  ;;  %p493_p13 = scmp.lt.u32.totalorder %s485_s6, %s693_s25 }
  0x67   : > { %p487_p0 = pnand %p486_p12, %p642_p9 }
  0x68   : > { %p492_p4 = por %p491_p3, %p490_p2 }
  0x69   : > { %p488_p1 = pneg %p487_p0 }
  0x6a   : > { %p494_p5 = por %p493_p13, %p492_p4 }
  0x6c   : > { %p495_p6 = pnand %p494_p5, %p488_p1 }
  0x6e   : > { %498 = shalt.err (!%p495_p6)
}
  0x6f   : > { %363 = dma.vmem_to_hbm [thread:$0]  (%p642_p9), %s697_s27, 128, %s693_s25, %s181_s29  }
  0x70 PF: > { %p369_p7 = scmp.ge.s32.totalorder %s561_s23, 2  ;;  %s207_s17 = sand.u32 1, %s541_s19  }
  0x71   : > { %p754_p8 = scmp.ne.s32.totalorder %s752_s30, 0  ;;  %s208_s24 = scalar_lea.sflag [#allocation8], %s207_s17 }
  0x73   : > { %p366_p10 = pnand %p369_p7, %p754_p8 }
  0x75   : > { %536 = dma.done.wait (!%p366_p10), %s208_s24, 128  }
  0x76   : > { %538 = vsyncadd (!%p366_p10), %s208_s24, 4294967168  ;;  %s24_s23 = sadd.s32 1, %s561_s23   ;;  %s755_s19 = smov %s545_s20 }
  0x77   : > { %p21_p11 = scmp.ge.s32.totalorder %s24_s23, 4   ;;  %s756_s20 = smov %s549_s0 }
  0x78   : > { %s757_s0 = smov %s655_s5  ;;  %s758_s21 = smov %s557_s22 }
  0x79   : > { %s759_s22 = smov %s761_s26  ;;  %23 = sbr.rel (!%p21_p11) target bundleno = 19 (0x13), region = 110 }
  0x80   :  { %213 = vsyncpa [#allocation8], 1 }
  0x81   :  { %215 = vsyncpa [#allocation8 + $0x1], 1 }
  0x82   :  { %216 = vsyncmov [#allocation3] }
  0x85   :  { %s217_s28 = vpop.sfrf %216 }
  0x86   :  { %p353_p9 = scmp.ne.s32.totalorder %s217_s28, 0 }
  0x88   :  { %221 = shalt.err (%p353_p9)  }
  0x89   :  { %223 = vsyncmov [#allocation3 + $0x1] }
  0x8c   :  { %s224_s30 = vpop.sfrf %223 }
  0x8d   :  { %p354_p12 = scmp.ne.s32.totalorder %s224_s30, 0 }
  0x8f   :  { %228 = shalt.err (%p354_p12)  }
  0x90   :  { %230 = vsyncmov [#allocation3 + $0x2] }
  0x93   :  { %s231_s14 = vpop.sfrf %230 }
  0x94   :  { %p355_p0 = scmp.ne.s32.totalorder %s231_s14, 0 }
  0x96   :  { %235 = shalt.err (%p355_p0)  }
  0x97   :  { %237 = vsyncmov [#allocation3 + $0x3] }
  0x9a   :  { %s238_s5 = vpop.sfrf %237 }
  0x9b   :  { %p356_p1 = scmp.ne.s32.totalorder %s238_s5, 0 }
  0x9d   :  { %242 = shalt.err (%p356_p1)  }
  0x9e   :  { %244 = vsyncmov [#allocation3 + $0x4] }
  0xa1   :  { %s245_s23 = vpop.sfrf %244 }
  0xa2   :  { %p357_p2 = scmp.ne.s32.totalorder %s245_s23, 0 }
  0xa4   :  { %249 = shalt.err (%p357_p2)  }
  0xa5   :  { %251 = vsyncmov [#allocation3 + $0x5] }
  0xa8   :  { %s252_s2 = vpop.sfrf %251 }
  0xa9   :  { %p358_p3 = scmp.ne.s32.totalorder %s252_s2, 0 }
  0xab   :  { %256 = shalt.err (%p358_p3)  }
  0xac   :  { %258 = vsyncmov [#allocation3 + $0x6] }
  0xaf   :  { %s259_s3 = vpop.sfrf %258 }
  0xb0   :  { %p359_p4 = scmp.ne.s32.totalorder %s259_s3, 0 }
  0xb2   :  { %263 = shalt.err (%p359_p4)  }
  0xb3   :  { %265 = vsyncmov [#allocation3 + $0x7] }
  0xb6   :  { %s266_s4 = vpop.sfrf %265 }
  0xb7   :  { %p360_p13 = scmp.ne.s32.totalorder %s266_s4, 0 }
  0xb9   :  { %270 = shalt.err (%p360_p13)  }

</bundles_post_ra>
